<compile_context>
chip_gen: v7x
topology: tpu7x:2x2x1
jax: 0.10.0
libtpu: 0.0.40
codegen_flags: <defaults>
</compile_context>

<pallas_src>
import jax
import jax.numpy as jnp
from jax.experimental import pallas as pl
from jax.experimental.pallas import tpu as pltpu

IN_FEATURES = 4          # nn.Linear(4, 3)
NUM_CLASSES = 3
C_PAD = 128              # lane-dense width for the VMEM-resident weight / bias / accumulator
MAX_BATCH_TILE = 8192    # rows per grid step (x: 128 KiB, out: 96 KiB per step -- tiny)


def _round_up(n, m):
    return (n + m - 1) // m * m


def _linear_kernel(x_ref, w_ref, b_ref, o_ref):
    # x: (tb, 4), w: (4, 128) = zero-padded W.T, b: (1, 128) = zero-padded bias.
    x = x_ref[...]                                                  # (tb, 4)
    acc = jnp.dot(x, w_ref[...], preferred_element_type=jnp.float32)  # (tb, 128) in vregs
    res = acc + b_ref[...]                                          # broadcast bias add
    # Only the 3 real classes go back to HBM (masked store; DMA is 12 B/row).
    o_ref[...] = res[:, :NUM_CLASSES].astype(o_ref.dtype)


def prepare_params(weight, bias):
    """One-time prep of PyTorch-layout params: (3,4)->(4,128) W.T, (3,)->(1,128) bias."""
    c, f = weight.shape
    w_padded = jnp.zeros((f, C_PAD), weight.dtype).at[:, :c].set(weight.T)
    b_padded = jnp.zeros((1, C_PAD), bias.dtype).at[0, :c].set(bias)
    return w_padded, b_padded


def _batch_tile(B):
    # Multiple of 8 sublanes; capped at MAX_BATCH_TILE; for large B keep >= 2 grid
    # steps so the "parallel" batch axis can be sharded across both v7x TensorCores.
    half = -(-B // 2)                       # ceil(B / 2)
    tb = _round_up(max(half, 1), 8)
    return max(8, min(MAX_BATCH_TILE, tb))


@jax.jit
def softmax_classifier_forward(x, w_padded, b_padded):
    """x: (B, 4) f32, w_padded: (4, 128), b_padded: (1, 128) -> logits (B, 3)."""
    B, _ = x.shape
    tb = _batch_tile(B)

    return pl.pallas_call(
        _linear_kernel,
        out_shape=jax.ShapeDtypeStruct((B, NUM_CLASSES), x.dtype),
        grid=(pl.cdiv(B, tb),),
        in_specs=[
            # x: feature dim (4) == full array dim, batch tile is a multiple of 8.
            pl.BlockSpec((tb, IN_FEATURES), lambda i: (i, 0)),
            # Constant index_maps: weight / bias stay VMEM-resident across the grid.
            pl.BlockSpec((IN_FEATURES, C_PAD), lambda i: (0, 0)),
            pl.BlockSpec((1, C_PAD), lambda i: (0, 0)),
        ],
        # Narrow HBM output: last dim (3) == full array dim -> legal block shape.
        out_specs=pl.BlockSpec((tb, NUM_CLASSES), lambda i: (i, 0)),
        compiler_params=pltpu.CompilerParams(
            dimension_semantics=("parallel",)),   # v7x: shard batch tiles across 2 TCs
    )(x, w_padded, b_padded)


def softmax_classifier_forward_auto(x, w_padded, b_padded, *, pallas_min_batch=256):
    """Dispatcher: at tiny batch sizes launch overhead dominates, so use plain XLA."""
    if x.shape[0] < pallas_min_batch:
        return x @ w_padded[:, :NUM_CLASSES] + b_padded[0, :NUM_CLASSES]
    return softmax_classifier_forward(x, w_padded, b_padded)


if __name__ == "__main__":
    key = jax.random.PRNGKey(0)
    kx, kw, kb, kx2 = jax.random.split(key, 4)

    # Deterministic parameter init (mimics PyTorch's U(-1/sqrt(F), 1/sqrt(F))).
    bound = 1.0 / (IN_FEATURES ** 0.5)
    weight = jax.random.uniform(kw, (NUM_CLASSES, IN_FEATURES), jnp.float32, -bound, bound)
    bias = jax.random.uniform(kb, (NUM_CLASSES,), jnp.float32, -bound, bound)

    # Param padding/transpose done once, outside the per-call hot path.
    w_padded, b_padded = prepare_params(weight, bias)

    # Small demo batch (calls the Pallas path directly so the kernel runs).
    B = 8
    x = jax.random.normal(kx, (B, IN_FEATURES), jnp.float32)
    out = jax.block_until_ready(softmax_classifier_forward(x, w_padded, b_padded))
    ref = x @ weight.T + bias
    assert out.shape == (B, NUM_CLASSES)
    assert jnp.allclose(out, ref, atol=1e-5, rtol=1e-5)

    # Ragged-batch check: exercises the cdiv grid with a masked last block.
    B2 = 19
    x2 = jax.random.normal(kx2, (B2, IN_FEATURES), jnp.float32)
    out2 = jax.block_until_ready(softmax_classifier_forward(x2, w_padded, b_padded))
    ref2 = x2 @ weight.T + bias
    assert out2.shape == (B2, NUM_CLASSES)
    assert jnp.allclose(out2, ref2, atol=1e-5, rtol=1e-5)

    print("KERNEL_OK")
</pallas_src>

<mosaic_0001>
module attributes {stable_mosaic.version = 11 : i64} {
  func.func @_linear_kernel(%arg0: i32, %arg1: memref<8x4xf32, #tpu.memory_space<vmem>>, %arg2: memref<4x128xf32, #tpu.memory_space<vmem>>, %arg3: memref<1x128xf32, #tpu.memory_space<vmem>>, %arg4: memref<8x3xf32, #tpu.memory_space<vmem>>) attributes {dimension_semantics = [#tpu.dimension_semantics<parallel>], iteration_bounds = array<i64: 1>, scalar_prefetch = 0 : i64, scratch_operands = 0 : i64, tpu.core_type = #tpu.core_type<tc>, window_params = [{transform_indices = @transform_0, window_bounds = array<i64: 8, 4>}, {pipeline_mode = #tpu.pipeline_mode<synchronous>, transform_indices = @transform_1, window_bounds = array<i64: 4, 128>}, {pipeline_mode = #tpu.pipeline_mode<synchronous>, transform_indices = @transform_2, window_bounds = array<i64: 1, 128>}, {transform_indices = @transform_3, window_bounds = array<i64: 8, 3>}]} {
    %c0 = arith.constant 0 : index
    %c0_0 = arith.constant 0 : index
    %0 = vector.load %arg1[%c0, %c0_0] : memref<8x4xf32, #tpu.memory_space<vmem>>, vector<8x4xf32>
    %c0_1 = arith.constant 0 : index
    %c0_2 = arith.constant 0 : index
    %1 = vector.load %arg2[%c0_1, %c0_2] : memref<4x128xf32, #tpu.memory_space<vmem>>, vector<4x128xf32>
    %cst = arith.constant dense<0.000000e+00> : vector<8x128xf32>
    %2 = tpu.matmul %0, %1, %cst {dimension_numbers = #tpu.dot_dimension_numbers<[1], [0], [0], [1], [0, 0, 1, 1], [], []>} : vector<8x4xf32>, vector<4x128xf32>, vector<8x128xf32> -> vector<8x128xf32>
    %c0_3 = arith.constant 0 : index
    %c0_4 = arith.constant 0 : index
    %3 = vector.load %arg3[%c0_3, %c0_4] : memref<1x128xf32, #tpu.memory_space<vmem>>, vector<1x128xf32>
    %4 = vector.broadcast %3 : vector<1x128xf32> to vector<8x128xf32>
    %5 = arith.addf %2, %4 : vector<8x128xf32>
    %6 = vector.extract_strided_slice %5 {offsets = [0, 0], sizes = [8, 3], strides = [1, 1]} : vector<8x128xf32> to vector<8x3xf32>
    %c0_5 = arith.constant 0 : index
    %c0_6 = arith.constant 0 : index
    %7 = vector.load %arg4[%c0_5, %c0_6] : memref<8x3xf32, #tpu.memory_space<vmem>>, vector<8x3xf32>
    tpu.vector_store %arg4[%c0_5, %c0_6], %6 {strides = array<i32>} : memref<8x3xf32, #tpu.memory_space<vmem>>, vector<8x3xf32>,
    return
  }
  func.func @transform_0(%arg0: i32) -> (i32, i32) {
    %c0_i32 = arith.constant 0 : i32
    %c0_i32_0 = arith.constant 0 : i32
    return %arg0, %c0_i32 : i32, i32
  }
  func.func @transform_1(%arg0: i32) -> (i32, i32) {
    %c0_i32 = arith.constant 0 : i32
    %c0_i32_0 = arith.constant 0 : i32
    %c0_i32_1 = arith.constant 0 : i32
    return %c0_i32, %c0_i32_0 : i32, i32
  }
  func.func @transform_2(%arg0: i32) -> (i32, i32) {
    %c0_i32 = arith.constant 0 : i32
    %c0_i32_0 = arith.constant 0 : i32
    %c0_i32_1 = arith.constant 0 : i32
    return %c0_i32, %c0_i32_0 : i32, i32
  }
  func.func @transform_3(%arg0: i32) -> (i32, i32) {
    %c0_i32 = arith.constant 0 : i32
    %c0_i32_0 = arith.constant 0 : i32
    return %arg0, %c0_i32 : i32, i32
  }
}

</mosaic_0001>

<bundles_post_ra>
// kernel: softmax_classifier_forward.1
= control target key start
LH: loop header
LB: loop body
LE: loop exit
PB: predicated region body
PF: predicated region fallthrough
CT: control target
= control target key end

     0   :  { %vm27_vm0 = vcmask 1043456   ;;  %vm23_vm1 = vcmask 31744   ;;  %v119_v0 = vmov 0.0   ;;  %vm120_vm2 = vmmov 0   ;;  %s153_s1 = inlined_call_operand.vmem [shape: f32[4,128], index: 1, kind: input, shape index: {}]   ;;  %s154_s0 = inlined_call_operand.vmem [shape: f32[8,4], index: 0, kind: input, shape index: {}]   ;;  %s155_s2 = inlined_call_operand.vmem [shape: f32[1,128], index: 2, kind: input, shape index: {}]   ;;  %s156_s3 = inlined_call_operand.vmem [shape: f32[8,3], index: 3, kind: output, shape index: {}]  }
   0x1   :  { %112 = vmatprep.subr.mxu0 %v119_v0  ;;  %v15_v1 = vld [vmem:[%s153_s1] sm:$0xf]  ;;  %114 = vmatprep.mubr.msk.f32.mxu0 %vm120_vm2, %v119_v0  ;;  %vm101_vm3 = vcmask 23552  }
   0x2   :  { %v14_v2 = vld [vmem:[%s154_s0] sm:$0xff]  ;;  %113 = vmatpush3.msk.msra.mxu0 %vm27_vm0, %v15_v1 }
   0x3   :  { %115 = vmatmul.mubr.msk.f32.vlgmr.msra.gmra.mrb[0].mxu0 %vm23_vm1, %v14_v2  ;;  %v107_v3 = vld [vmem:[%s155_s2] ss:$0 sm:$0xff] }
  0xd6   :  { %v97_v4 = vpop.f32.mrb[0].mxu0 }
  0xd7   :  { %v98_v5 = vadd.f32 %v107_v3, %v97_v4  ;;  %v116_v6 = vpop.f32.mrb[1].mxu0 }
  0xd9   :  { %102 = vst.msk [vmem:[%s156_s3] sm:$0xff] %vm101_vm3, %v98_v5 }

</bundles_post_ra>
